<compile_context>
chip_gen: v7x
topology: tpu7x:2x2x1
jax: 0.10.0
libtpu: 0.0.40
codegen_flags: <defaults>
</compile_context>

<pallas_src>
import math
import functools
import numpy as np

import jax
import jax.numpy as jnp
from jax import lax
from jax.experimental import pallas as pl
from jax.experimental.pallas import tpu as pltpu


def _round_up(x, m):
    return (x + m - 1) // m * m


def _vmem_capacity_bytes():
    """Physical VMEM of the current chip; conservative fallback if unknown."""
    try:
        return int(pltpu.get_tpu_info().vmem_capacity_bytes)
    except Exception:
        return 64 << 20  # v7x per-TensorCore VMEM (most restrictive)


# ----------------------------------------------------------------------------
# Deterministic parameter / buffer init (mirrors SincConv_fast.__init__)
# ----------------------------------------------------------------------------
def to_mel(hz):
    return 2595.0 * np.log10(1.0 + hz / 700.0)


def to_hz(mel):
    return 700.0 * (10.0 ** (mel / 2595.0) - 1.0)


def init_sinc_params(out_channels, kernel_size, sample_rate=16000,
                     min_low_hz=50, min_band_hz=50):
    if kernel_size % 2 == 0:
        kernel_size += 1
    C, K = out_channels, kernel_size
    C_pad = _round_up(C, 8)       # sublane-aligned channel dim
    K_pad = _round_up(K, 8)       # sublane-aligned tap dim (contraction)

    high_hz = sample_rate / 2 - (min_low_hz + min_band_hz)
    mel = np.linspace(to_mel(0.0), to_mel(high_hz), C + 1)
    hz = to_hz(mel)
    low_hz_ = np.zeros((C_pad, 1), np.float32)
    band_hz_ = np.zeros((C_pad, 1), np.float32)
    low_hz_[:C, 0] = hz[:-1]
    band_hz_[:C, 0] = np.diff(hz)

    kh = K // 2
    n_lin = np.linspace(0.0, K / 2 - 1, int(K / 2))
    window_half = (0.54 - 0.46 * np.cos(2.0 * math.pi * n_lin / K)
                   ).astype(np.float32)                          # (kh,)
    n_half = (2.0 * math.pi * np.arange(-kh, 0) / sample_rate
              ).astype(np.float32)                               # (kh,)

    # Full symmetric buffers so the Pallas kernel needs no flip/concat: the
    # band-pass formula is even in n, so band_pass_right == reversed left when
    # the half window is mirrored; the center tap is handled via a mask.
    # K padding: n=1 (dummy, avoids 0/0) and window=0 => exactly-zero taps.
    n_full = np.ones(K_pad, np.float32)
    win_full = np.zeros(K_pad, np.float32)
    center_mask = np.zeros(K_pad, np.float32)
    n_full[:K] = np.concatenate([n_half, [0.0], -n_half[::-1]])
    win_full[:K] = np.concatenate([window_half, [1.0], window_half[::-1]])
    center_mask[kh] = 1.0

    # Invariant the conv kernel relies on: padded taps K..K_pad-1 are exactly
    # zero (their window is zero), so reads past the logical window / into the
    # zero-padded tail of the waveform contribute nothing to valid outputs.
    assert np.all(win_full[K:] == 0.0)

    return dict(
        kernel_size=K, out_channels=C, C_pad=C_pad, K_pad=K_pad,
        low_hz_=jnp.asarray(low_hz_),                   # (C_pad, 1)
        band_hz_=jnp.asarray(band_hz_),                 # (C_pad, 1)
        n_full=jnp.asarray(n_full)[None, :],            # (1, K_pad)
        win_full=jnp.asarray(win_full)[None, :],        # (1, K_pad)
        center_mask=jnp.asarray(center_mask)[None, :],  # (1, K_pad)
    )


# ----------------------------------------------------------------------------
# Kernel 1: build the padded sinc band-pass filter bank (tiny, elementwise)
# ----------------------------------------------------------------------------
def _filter_kernel(low_ref, band_ref, n_ref, win_ref, mask_ref, filt_ref,
                   *, sample_rate, min_low_hz, min_band_hz):
    low = min_low_hz + jnp.abs(low_ref[...])                          # (C_pad, 1)
    high = jnp.clip(low + min_band_hz + jnp.abs(band_ref[...]),
                    min_low_hz, sample_rate / 2)                      # (C_pad, 1)
    band = high - low                                                 # (C_pad, 1)

    n = n_ref[...]                                                    # (1, K_pad)
    win = win_ref[...]                                                # (1, K_pad)
    is_center = mask_ref[...] > 0.0                                   # (1, K_pad)

    safe_half_n = jnp.where(is_center, 1.0, 0.5 * n)
    band_pass = (jnp.sin(high * n) - jnp.sin(low * n)) / safe_half_n * win
    band_pass = jnp.where(is_center, 2.0 * band, band_pass)           # (C_pad, K_pad)
    # Division by 2*band matches PyTorch exactly (no epsilon guard; degenerate
    # learned params produce inf/NaN identically to the reference).
    filt_ref[...] = band_pass / (2.0 * band)


def build_sinc_filters(params, sample_rate, min_low_hz, min_band_hz):
    C_pad = params["low_hz_"].shape[0]
    K_pad = params["n_full"].shape[1]
    kern = functools.partial(_filter_kernel, sample_rate=sample_rate,
                             min_low_hz=min_low_hz, min_band_hz=min_band_hz)
    return pl.pallas_call(
        kern,
        out_shape=jax.ShapeDtypeStruct((C_pad, K_pad), jnp.float32),
    )(params["low_hz_"], params["band_hz_"], params["n_full"],
      params["win_full"], params["center_mask"])


# ----------------------------------------------------------------------------
# Kernel 2: 1-D valid convolution as im2col + one MXU matmul per time tile
# ----------------------------------------------------------------------------
def _conv_im2col_kernel(w_ref, x0_ref, xh_ref, o_ref, win8_ref, xcol_ref, *,
                        k_pad, l_tile, halo, sub, chunk):
    # --- 1) Build 8 lane-shifted copies of this tile's window ---------------
    # win8[r, c] = x[t0 + r + c]; sources are the (1,1,l_tile) tile block plus
    # the (1,1,halo) halo block.  Copies are chunked so only a few vregs are
    # live at a time (no full-row hoisted values).
    nc = l_tile // chunk
    for r in range(8):
        for i in range(nc):
            ln = chunk if i < nc - 1 else chunk - r        # ragged last chunk
            win8_ref[r, i * chunk: i * chunk + ln] = \
                x0_ref[0, 0, r + i * chunk: r + i * chunk + ln]
        # splice the halo right after the tile's samples (columns shift by -r)
        win8_ref[r, l_tile - r: l_tile - r + halo] = xh_ref[0, 0, :]

    # --- 2) Sublane-dense im2col staging -------------------------------------
    # Row k = 8g + r of xcol is x[t0 + k : t0 + k + l_tile]; an (8, sub) block
    # at [8g, c0] equals win8[:, 8g + c0 : 8g + c0 + sub], so each block is a
    # single full-vreg load + aligned full-vreg store (static offsets only).
    for g in range(k_pad // 8):
        g8 = g * 8
        for j in range(l_tile // sub):
            c0 = j * sub
            xcol_ref[g8:g8 + 8, c0:c0 + sub] = \
                win8_ref[:, g8 + c0: g8 + c0 + sub]

    # --- 3) One MXU matmul per tile: (C_pad, K_pad) @ (K_pad, l_tile) --------
    o_ref[0] = jnp.dot(w_ref[...], xcol_ref[...],
                       preferred_element_type=jnp.float32).astype(o_ref.dtype)


def sinc_conv1d(x_b1t, filters_pad, kernel_size, out_channels, l_tile=8192):
    B, cin, T = x_b1t.shape
    assert cin == 1, "SincConv only supports one input channel"
    C_pad, K_pad = filters_pad.shape
    K = kernel_size
    L = T - K + 1
    assert L > 0, "waveform shorter than the kernel"

    halo = _round_up(K_pad, 128)                 # halo block width (lanes)
    # Time tile: multiple of `halo` (so the halo block lands exactly on a
    # block boundary), at least `halo`, no larger than the padded output.
    l_tile = max(halo, min(l_tile, _round_up(L, halo)))
    l_tile = _round_up(l_tile, halo)

    cap = _vmem_capacity_bytes()

    def working_set(lt):
        return 4 * (2 * C_pad * K_pad            # resident filter (dbl-buffered)
                    + 2 * lt + 2 * halo          # tile + halo input blocks
                    + 2 * C_pad * lt             # output tile (dbl-buffered)
                    + 8 * (lt + halo)            # shifted-window scratch
                    + K_pad * lt)                # im2col scratch

    # Shrink the tile until the working set uses <~40% of physical VMEM
    # (keeps pipelining headroom on v7x's 64 MiB as well as v5e/v6e's 128 MiB).
    while l_tile > halo and working_set(l_tile) > (cap * 2) // 5:
        l_tile = max(halo, _round_up(l_tile // 2, halo))

    sub = 512                                    # lane sub-tile for staging
    while l_tile % sub:
        sub //= 2                                # l_tile is a multiple of 128
    chunk = min(2048, l_tile)                    # lane chunk for window copies
    while l_tile % chunk:
        chunk //= 2

    n_t = pl.cdiv(L, l_tile)
    T_pad = n_t * l_tile + halo                  # every input block stays in-range
    x_pad = jnp.pad(x_b1t, ((0, 0), (0, 0), (0, T_pad - T)))

    vmem_limit = int(min(max(2 * working_set(l_tile), 32 << 20),
                         (cap * 9) // 10))

    hb = l_tile // halo                          # halo blocks per time tile
    kern = functools.partial(_conv_im2col_kernel, k_pad=K_pad, l_tile=l_tile,
                             halo=halo, sub=sub, chunk=chunk)
    out = pl.pallas_call(
        kern,
        # Output time axis is NOT padded: the last block is ragged (l_tile is
        # 128-divisible, so allowed) and Pallas only writes the in-range part,
        # avoiding a full-output HBM slice in the wrapper.
        out_shape=jax.ShapeDtypeStruct((B, C_pad, L), x_b1t.dtype),
        grid_spec=pltpu.PrefetchScalarGridSpec(
            num_scalar_prefetch=0,
            grid=(B, n_t),
            in_specs=[
                pl.BlockSpec((C_pad, K_pad), lambda b, t: (0, 0)),     # resident
                pl.BlockSpec((1, 1, l_tile), lambda b, t: (b, 0, t)),  # tile t
                pl.BlockSpec((1, 1, halo),                             # halo only
                             lambda b, t: (b, 0, (t + 1) * hb)),
            ],
            out_specs=pl.BlockSpec((1, C_pad, l_tile), lambda b, t: (b, 0, t)),
            scratch_shapes=[
                pltpu.VMEM((8, l_tile + halo), jnp.float32),   # shifted window
                pltpu.VMEM((K_pad, l_tile), jnp.float32),      # im2col matrix
            ],
        ),
        compiler_params=pltpu.CompilerParams(
            dimension_semantics=("parallel", "parallel"),
            vmem_limit_bytes=vmem_limit,
        ),
    )(filters_pad, x_pad, x_pad)

    if out_channels != C_pad:
        # Padded channel rows are a *real* 50-100 Hz band-pass (low_hz_=0,
        # band_hz_=0 rows), not zeros -- this slice must never be dropped.
        out = out[:, :out_channels, :]
    return out


def sincconv_forward(waveforms, params, sample_rate=16000,
                     min_low_hz=50, min_band_hz=50, l_tile=8192):
    """waveforms: (B, 1, T) -> (B, out_channels, T - K + 1)"""
    filters = build_sinc_filters(params, sample_rate, min_low_hz, min_band_hz)
    return sinc_conv1d(waveforms, filters, params["kernel_size"],
                       params["out_channels"], l_tile=l_tile)


# ----------------------------------------------------------------------------
# Pure-JAX reference (mirrors the PyTorch forward exactly, incl. flip/concat)
# ----------------------------------------------------------------------------
def reference_forward(waveforms, out_channels, kernel_size, sample_rate=16000,
                      min_low_hz=50, min_band_hz=50):
    if kernel_size % 2 == 0:
        kernel_size += 1
    high_hz = sample_rate / 2 - (min_low_hz + min_band_hz)
    mel = np.linspace(to_mel(0.0), to_mel(high_hz), out_channels + 1)
    hz = to_hz(mel)
    low_hz_ = jnp.asarray(hz[:-1].reshape(-1, 1), jnp.float32)
    band_hz_ = jnp.asarray(np.diff(hz).reshape(-1, 1), jnp.float32)

    kh = kernel_size // 2
    n_lin = jnp.linspace(0.0, kernel_size / 2 - 1, int(kernel_size / 2))
    window_ = 0.54 - 0.46 * jnp.cos(2.0 * math.pi * n_lin / kernel_size)
    n_ = (2.0 * math.pi * jnp.arange(-kh, 0, dtype=jnp.float32)
          / sample_rate)[None, :]

    low = min_low_hz + jnp.abs(low_hz_)
    high = jnp.clip(low + min_band_hz + jnp.abs(band_hz_),
                    min_low_hz, sample_rate / 2)
    band = (high - low)[:, 0]
    f_low = low @ n_
    f_high = high @ n_
    left = (jnp.sin(f_high) - jnp.sin(f_low)) / (n_ / 2) * window_
    center = 2.0 * band[:, None]
    right = left[:, ::-1]
    bp = jnp.concatenate([left, center, right], axis=1) / (2.0 * band[:, None])
    filt = bp.reshape(out_channels, 1, kernel_size)
    return lax.conv_general_dilated(
        waveforms, filt, window_strides=(1,), padding="VALID",
        dimension_numbers=("NCH", "OIH", "NCH"),
        precision=lax.Precision.HIGHEST)


# ----------------------------------------------------------------------------
if __name__ == "__main__":
    out_channels = 8
    kernel_size = 16          # -> 17 internally (forced odd, as in the module)
    sample_rate = 16000
    B, T = 2, 2200            # L = 2184 -> 3 time tiles of 1024 + ragged tail

    key = jax.random.PRNGKey(0)
    waveforms = jax.random.normal(key, (B, 1, T), dtype=jnp.float32)

    params = init_sinc_params(out_channels, kernel_size, sample_rate)
    # Small l_tile for the demo so the multi-tile, halo and ragged-last-block
    # paths are all exercised; real SincNet shapes use the default l_tile=8192.
    out = sincconv_forward(waveforms, params, sample_rate, l_tile=1024)
    out = jax.block_until_ready(out)

    ref = reference_forward(waveforms, out_channels, kernel_size, sample_rate)
    expected_shape = (B, out_channels, T - params["kernel_size"] + 1)
    assert out.shape == expected_shape and ref.shape == expected_shape
    np.testing.assert_allclose(np.asarray(out), np.asarray(ref),
                               rtol=1e-4, atol=1e-4)
    print("KERNEL_OK")
</pallas_src>

<mosaic_0001>
module attributes {stable_mosaic.version = 11 : i64} {
  func.func @_filter_kernel(%arg0: memref<8x1xf32, #tpu.memory_space<vmem>>, %arg1: memref<8x1xf32, #tpu.memory_space<vmem>>, %arg2: memref<1x24xf32, #tpu.memory_space<vmem>>, %arg3: memref<1x24xf32, #tpu.memory_space<vmem>>, %arg4: memref<1x24xf32, #tpu.memory_space<vmem>>, %arg5: memref<8x24xf32, #tpu.memory_space<vmem>>) attributes {dimension_semantics = [], scalar_prefetch = 0 : i64, scratch_operands = 0 : i64, tpu.core_type = #tpu.core_type<tc>} {
    %c0 = arith.constant 0 : index
    %c0_0 = arith.constant 0 : index
    %0 = vector.load %arg0[%c0, %c0_0] : memref<8x1xf32, #tpu.memory_space<vmem>>, vector<8x1xf32>
    %1 = math.absf %0 : vector<8x1xf32>
    %cst = arith.constant 5.000000e+01 : f32
    %2 = vector.broadcast %cst : f32 to vector<8x1xf32>
    %3 = arith.addf %2, %1 : vector<8x1xf32>
    %cst_1 = arith.constant 5.000000e+01 : f32
    %4 = vector.broadcast %cst_1 : f32 to vector<8x1xf32>
    %5 = arith.addf %3, %4 : vector<8x1xf32>
    %c0_2 = arith.constant 0 : index
    %c0_3 = arith.constant 0 : index
    %6 = vector.load %arg1[%c0_2, %c0_3] : memref<8x1xf32, #tpu.memory_space<vmem>>, vector<8x1xf32>
    %7 = math.absf %6 : vector<8x1xf32>
    %8 = arith.addf %5, %7 : vector<8x1xf32>
    %c50_i32 = arith.constant 50 : i32
    %cst_4 = arith.constant 8.000000e+03 : f32
    %9 = arith.sitofp %c50_i32 : i32 to f32
    %10 = vector.broadcast %9 : f32 to vector<8x1xf32>
    %11 = arith.maximumf %10, %8 : vector<8x1xf32>
    %12 = vector.broadcast %cst_4 : f32 to vector<8x1xf32>
    %13 = arith.minimumf %12, %11 : vector<8x1xf32>
    %14 = arith.subf %13, %3 : vector<8x1xf32>
    %c0_5 = arith.constant 0 : index
    %c0_6 = arith.constant 0 : index
    %15 = vector.load %arg2[%c0_5, %c0_6] : memref<1x24xf32, #tpu.memory_space<vmem>>, vector<1x24xf32>
    %c0_7 = arith.constant 0 : index
    %c0_8 = arith.constant 0 : index
    %16 = vector.load %arg3[%c0_7, %c0_8] : memref<1x24xf32, #tpu.memory_space<vmem>>, vector<1x24xf32>
    %c0_9 = arith.constant 0 : index
    %c0_10 = arith.constant 0 : index
    %17 = vector.load %arg4[%c0_9, %c0_10] : memref<1x24xf32, #tpu.memory_space<vmem>>, vector<1x24xf32>
    %cst_11 = arith.constant 0.000000e+00 : f32
    %18 = vector.broadcast %cst_11 : f32 to vector<1x24xf32>
    %19 = arith.cmpf ogt, %17, %18 : vector<1x24xf32>
    %cst_12 = arith.constant 5.000000e-01 : f32
    %20 = vector.broadcast %cst_12 : f32 to vector<1x24xf32>
    %21 = arith.mulf %20, %15 : vector<1x24xf32>
    %cst_13 = arith.constant 1.000000e+00 : f32
    %22 = vector.broadcast %cst_13 : f32 to vector<1x24xf32>
    %23 = arith.select %19, %22, %21 : vector<1x24xi1>, vector<1x24xf32>
    %24 = vector.broadcast %13 : vector<8x1xf32> to vector<8x24xf32>
    %25 = vector.broadcast %15 : vector<1x24xf32> to vector<8x24xf32>
    %26 = arith.mulf %24, %25 : vector<8x24xf32>
    %27 = math.sin %26 : vector<8x24xf32>
    %28 = vector.broadcast %3 : vector<8x1xf32> to vector<8x24xf32>
    %29 = vector.broadcast %15 : vector<1x24xf32> to vector<8x24xf32>
    %30 = arith.mulf %28, %29 : vector<8x24xf32>
    %31 = math.sin %30 : vector<8x24xf32>
    %32 = arith.subf %27, %31 : vector<8x24xf32>
    %33 = vector.broadcast %23 : vector<1x24xf32> to vector<8x24xf32>
    %34 = arith.divf %32, %33 : vector<8x24xf32>
    %35 = vector.broadcast %16 : vector<1x24xf32> to vector<8x24xf32>
    %36 = arith.mulf %34, %35 : vector<8x24xf32>
    %cst_14 = arith.constant 2.000000e+00 : f32
    %37 = vector.broadcast %cst_14 : f32 to vector<8x1xf32>
    %38 = arith.mulf %37, %14 : vector<8x1xf32>
    %39 = vector.shape_cast %19 : vector<1x24xi1> to vector<1x24xi1>
    %40 = vector.broadcast %39 : vector<1x24xi1> to vector<8x24xi1>
    %41 = vector.shape_cast %38 : vector<8x1xf32> to vector<8x1xf32>
    %42 = vector.broadcast %41 : vector<8x1xf32> to vector<8x24xf32>
    %43 = arith.select %40, %42, %36 : vector<8x24xi1>, vector<8x24xf32>
    %cst_15 = arith.constant 2.000000e+00 : f32
    %44 = vector.broadcast %cst_15 : f32 to vector<8x1xf32>
    %45 = arith.mulf %44, %14 : vector<8x1xf32>
    %46 = vector.broadcast %45 : vector<8x1xf32> to vector<8x24xf32>
    %47 = arith.divf %43, %46 : vector<8x24xf32>
    %c0_16 = arith.constant 0 : index
    %c0_17 = arith.constant 0 : index
    %48 = vector.load %arg5[%c0_16, %c0_17] : memref<8x24xf32, #tpu.memory_space<vmem>>, vector<8x24xf32>
    tpu.vector_store %arg5[%c0_16, %c0_17], %47 {strides = array<i32>} : memref<8x24xf32, #tpu.memory_space<vmem>>, vector<8x24xf32>,
    return
  }
}

</mosaic_0001>

<bundles_post_ra>
// kernel: tpu_custom_call.1
= control target key start
LH: loop header
LB: loop body
LE: loop exit
PB: predicated region body
PF: predicated region fallthrough
CT: control target
= control target key end

     0   :  { %v373_v2 = vmov 0   ;;  %s529_s0 = inlined_call_operand.vmem [shape: f32[8,1], index: 0, kind: input, shape index: {}]   ;;  %s530_s1 = inlined_call_operand.vmem [shape: f32[8,1], index: 1, kind: input, shape index: {}]   ;;  %s531_s2 = inlined_call_operand.vmem [shape: f32[1,24], index: 2, kind: input, shape index: {}]   ;;  %s532_s3 = inlined_call_operand.vmem [shape: f32[1,24], index: 3, kind: input, shape index: {}]   ;;  %s533_s4 = inlined_call_operand.vmem [shape: f32[1,24], index: 4, kind: input, shape index: {}]   ;;  %s534_s5 = inlined_call_operand.hbm [shape: f32[8,24], index: 5, kind: output, shape index: {}]  }
   0x1   :  { %v21_v0 = vld [vmem:[%s529_s0] sm:$0xff]  ;;  %335 = vset.pattern.permute.xlu0 %v373_v2  ;;  %336 = vset.pattern.permute.xlu1 %v373_v2 }
   0x2   :  { %v25_v1 = vld [vmem:[%s530_s1] sm:$0xff]  ;;  %v22_v3 = vand.u32 2147483647, %v21_v0 }
   0x3   :  { %v26_v5 = vand.u32 2147483647, %v25_v1 }
   0x4   :  { %v23_v4 = vadd.f32 50.0, %v22_v3 }
   0x6   :  { %v24_v6 = vadd.f32 50.0, %v23_v4 }
   0x7   :  { %10 = vsyncpa [#allocation3], 0  ;;  %v43_v12 = vlaneseq  ;;  %v424_v15 = vld [vmem:[%s531_s2] sm:$0x1]  ;;  %v374_v37 = vmov 683565275  }
   0x8   :  { %v27_v7 = vadd.f32 %v26_v5, %v24_v6  ;;  %v375_v41 = vmov 2475754826   ;;  %v376_v43 = vmov 2131351028   ;;  %v377_v45 = vmov 2102212464  }
   0x9   :  { %v44_v13 = vshrl.u32 %v43_v12, 7  ;;  %v378_v47 = vmov 920167782   ;;  %v379_v54 = vmov 1326507024   ;;  %s380_s24 = smov [#allocation2]  }
   0xa   :  { %v28_v8 = vmax.f32 %v27_v7, 50.0  ;;  %s302_s25 = sshll.u32 %s380_s24, 4  ;;  %s303_s25 = int_to_ptr.vmem [resolvable:$true] %s302_s25 }
   0xb   :  { %v419_v14 = vsub.s32 0, %v44_v13  ;;  %s349_s26 = scalar_lea.vmem %s303_s25, 128  ;;  %p354_p1 = scmp.lt.s32.totalorder %s303_s25, %s303_s25 }
   0xc   :  { %v29_v9 = vmin.f32 %v28_v8, 8000.0  ;;  %p350_p0 = scmp.ne.s32.totalorder %s303_s25, %s349_s26  ;;  %p355_p2 = scmp.lt.s32.totalorder %s349_s26, %s349_s26 }
   0xd   :  { %v46_v16 = vrot.slane %v424_v15, %v419_v14 }
   0xe   :  { %39 = vperm.xlu0 %335, %v29_v9   ;;  %v30_v10 = vsub.f32 %v29_v9, %v23_v4  ;;  %p356_p3 = por %p355_p2, %p354_p1 }
  0x10   :  { %v279_v11 = vmul.f32 2.0, %v30_v10  ;;  %p357_p4 = pnand %p356_p3, %p350_p0 }
  0x12   :  { %155 = vperm.xlu0 %335, %v23_v4   ;;  %288 = vperm.xlu1 %336, %v279_v11  }
  0x8d   :  { %v40_v17 = vpop.permute.xlu0 %39 }
  0x8e   :  { %v428_v18 = vmul.f32 %v46_v16, %v40_v17 }
  0x90   :  { %v49_v19 = vand.u32 2147483647, %v428_v18  ;;  %v52_v20 = vand.u32 2139095040, %v428_v18  ;;  %vm51_vm14 = vcmp.lt.s32.totalorder %v428_v18, 0 }
  0x91   :  { %v156_v21 = vpop.permute.xlu0 %155 }
  0x92   :  { %v53_v22 = vshrl.u32 %v52_v20, 23  ;;  %v432_v23 = vmul.f32 %v156_v21, %v46_v16  ;;  %v56_v24 = vand.u32 8388607, %v49_v19  ;;  %vm486_vm15 = vcmp.le.f32.partialorder %v49_v19, 0.7853982 }
  0x94   :  { %v310_v25 = vadd.s32 4294967169, %v53_v22  ;;  %v162_v26 = vand.u32 2139095040, %v432_v23  ;;  %v57_v28 = vor.u32 8388608, %v56_v24  ;;  %v159_v30 = vand.u32 2147483647, %v432_v23 }
  0x96   :  { %v59_v27 = vadd.s32 1, %v310_v25  ;;  %v163_v29 = vshrl.u32 %v162_v26, 23  ;;  %v438_v35 = vshll.u32 %v57_v28, 8  ;;  %v166_v39 = vand.u32 8388607, %v159_v30 }
  0x98   :  { %vm60_vm0 = vcmp.gt.s32.totalorder %v59_v27, 0  ;;  %v314_v32 = vadd.s32 4294967169, %v163_v29  ;;  %v167_v6 = vor.u32 8388608, %v166_v39 }
  0x99   :  { %v61_v31 = vsel %vm60_vm0, %v59_v27, 0 }
  0x9a   :  { %v62_v33 = vshrl.u32 %v61_v31, 5  ;;  %v63_v34 = vand.u32 31, %v61_v31  ;;  %v169_v40 = vadd.s32 1, %v314_v32  ;;  %v207_v24 = vshll.u32 %v167_v6, 8 }
  0x9c   :  { %v64_v36 = vsub.s32 32, %v63_v34  ;;  %v66_v38 = vshll.u32 %v374_v37, %v63_v34  ;;  %v69_v42 = vshll.u32 %v375_v41, %v63_v34  ;;  %v72_v44 = vshll.u32 %v376_v43, %v63_v34 }
  0x9d   :  { %v75_v46 = vshll.u32 %v377_v45, %v63_v34  ;;  %v78_v48 = vshll.u32 %v378_v47, %v63_v34  ;;  %vm81_vm1 = vcmp.lt.s32.totalorder %v62_v33, 1  ;;  %vm83_vm2 = vcmp.lt.s32.totalorder %v62_v33, 3 }
  0x9e   :  { %v67_v49 = vshrl.u32 %v375_v41, %v64_v36  ;;  %v70_v50 = vshrl.u32 %v376_v43, %v64_v36  ;;  %v73_v51 = vshrl.u32 %v377_v45, %v64_v36  ;;  %v65_v52 = vshrl.u32 %v374_v37, %v64_v36 }
  0x9f   :  { %v76_v53 = vshrl.u32 %v378_v47, %v64_v36  ;;  %v79_v55 = vshrl.u32 %v379_v54, %v64_v36  ;;  %vm170_vm3 = vcmp.gt.s32.totalorder %v169_v40, 0  ;;  %vm84_vm4 = vcmp.lt.s32.totalorder %v62_v33, 4 }
  0xa0   :  { %v68_v56 = vor.u32 %v67_v49, %v66_v38  ;;  %v71_v57 = vor.u32 %v70_v50, %v69_v42  ;;  %v74_v58 = vor.u32 %v73_v51, %v72_v44  ;;  %v171_v61 = vsel %vm170_vm3, %v169_v40, 0 }
  0xa1   :  { %v77_v59 = vor.u32 %v76_v53, %v75_v46  ;;  %v80_v60 = vor.u32 %v79_v55, %v78_v48  ;;  %vm82_vm5 = vcmp.lt.s32.totalorder %v62_v33, 2  ;;  %v173_v9 = vand.u32 31, %v171_v61 }
  0xa2   :  { %v85_v62 = vsel %vm81_vm1, %v65_v52, %v68_v56  ;;  %v86_v63 = vsel %vm84_vm4, %v74_v58, 2102212464  ;;  %v89_v0 = vsel %vm81_vm1, %v68_v56, %v71_v57  ;;  %v93_v1 = vsel %vm81_vm1, %v71_v57, %v74_v58 }
  0xa3   :  { %v87_v3 = vsel %vm83_vm2, %v71_v57, %v86_v63  ;;  %v90_v4 = vsel %vm84_vm4, %v77_v59, 920167782  ;;  %v94_v5 = vsel %vm84_vm4, %v80_v60, 1326507024  ;;  %v172_v21 = vshrl.u32 %v171_v61, 5 }
  0xa4   :  { %v91_v7 = vsel %vm83_vm2, %v74_v58, %v90_v4  ;;  %v95_v8 = vsel %vm83_vm2, %v77_v59, %v94_v5  ;;  %v88_v10 = vsel %vm82_vm5, %v85_v62, %v87_v3  ;;  %v174_v22 = vsub.s32 32, %v173_v9 }
  0xa5   :  { %v92_v11 = vsel %vm82_vm5, %v89_v0, %v91_v7  ;;  %v96_v12 = vsel %vm82_vm5, %v93_v1, %v95_v8  ;;  %v104_v25 = vmul.u32 %v438_v35, %v88_v10  ;;  %v176_v26 = vshll.u32 %v374_v37, %v173_v9 }
  0xa6   :  { %v451_v13 = vmul.u32.u64.low %v438_v35, %v96_v12  ;;  %v452_v16 = vmul.u32.u64.high %v438_v35, %v96_v12, %v451_v13  ;;  %v455_v17 = vmul.u32.u64.low %v438_v35, %v92_v11  ;;  %v456_v20 = vmul.u32.u64.high %v438_v35, %v92_v11, %v455_v17 }
  0xa7   :  { %v179_v27 = vshll.u32 %v375_v41, %v173_v9  ;;  %v182_v28 = vshll.u32 %v376_v43, %v173_v9  ;;  %v177_v29 = vshrl.u32 %v375_v41, %v174_v22  ;;  %v180_v31 = vshrl.u32 %v376_v43, %v174_v22 }
  0xa8   :  { %v183_v32 = vshrl.u32 %v377_v45, %v174_v22  ;;  %v185_v33 = vshll.u32 %v377_v45, %v173_v9  ;;  %vm106_vm6 = vc.u32 %v452_v16, %v455_v17  ;;  %v107_v34 = vadd.s32 1, %v456_v20 }
  0xa9   :  { %v186_v36 = vshrl.u32 %v378_v47, %v174_v22  ;;  %v188_v38 = vshll.u32 %v378_v47, %v173_v9  ;;  %v178_v39 = vor.u32 %v177_v29, %v176_v26  ;;  %v181_v40 = vor.u32 %v180_v31, %v179_v27 }
  0xaa   :  { %v184_v42 = vor.u32 %v183_v32, %v182_v28  ;;  %v189_v44 = vshrl.u32 %v379_v54, %v174_v22  ;;  %v108_v35 = vsel %vm106_vm6, %v107_v34, %v456_v20  ;;  %vm191_vm7 = vcmp.lt.s32.totalorder %v172_v21, 1 }
  0xab   :  { %v187_v46 = vor.u32 %v186_v36, %v185_v33  ;;  %vm194_vm8 = vcmp.lt.s32.totalorder %v172_v21, 4  ;;  %v109_v41 = vadd.s32 %v108_v35, %v104_v25  ;;  %vm193_vm9 = vcmp.lt.s32.totalorder %v172_v21, 3 }
  0xac   :  { %v190_v43 = vor.u32 %v189_v44, %v188_v38  ;;  %v196_v45 = vsel %vm194_vm8, %v184_v42, 2102212464  ;;  %v175_v48 = vshrl.u32 %v374_v37, %v174_v22  ;;  %v199_v49 = vsel %vm191_vm7, %v178_v39, %v181_v40 }
  0xad   :  { %v200_v50 = vsel %vm194_vm8, %v187_v46, 920167782  ;;  %v203_v51 = vsel %vm191_vm7, %v181_v40, %v184_v42  ;;  %v110_v52 = vadd.s32 536870912, %v109_v41  ;;  %vm192_vm10 = vcmp.lt.s32.totalorder %v172_v21, 2 }
  0xae   :  { %v201_v47 = vsel %vm193_vm9, %v184_v42, %v200_v50  ;;  %v204_v53 = vsel %vm194_vm8, %v190_v43, 1326507024  ;;  %v195_v55 = vsel %vm191_vm7, %v175_v48, %v178_v39  ;;  %v197_v54 = vsel %vm193_vm9, %v181_v40, %v196_v45 }
  0xaf   :  { %v202_v56 = vsel %vm192_vm10, %v199_v49, %v201_v47  ;;  %v205_v57 = vsel %vm193_vm9, %v187_v46, %v204_v53  ;;  %v466_v58 = vshrl.u32 %v110_v52, 30  ;;  %v198_v0 = vsel %vm192_vm10, %v195_v55, %v197_v54 }
  0xb0   :  { %v206_v59 = vsel %vm192_vm10, %v203_v51, %v205_v57  ;;  %v468_v60 = vmul.u32.u64.low %v207_v24, %v202_v56  ;;  %v469_v61 = vmul.u32.u64.high %v207_v24, %v202_v56, %v468_v60  ;;  %v214_v4 = vmul.u32 %v207_v24, %v198_v0  ;;  %v33_v56 = vld [vmem:[%s533_s4] sm:$0x1] }
  0xb1   :  { %v471_v62 = vmul.u32.u64.low %v207_v24, %v206_v59  ;;  %v472_v63 = vmul.u32.u64.high %v207_v24, %v206_v59, %v471_v62  ;;  %v112_v37 = vshll.u32 %v466_v58, 30  ;;  %v105_v22 = vadd.s32 %v455_v17, %v452_v16 }
  0xb2   :  { %v217_v3 = vadd.s32 1, %v469_v61  ;;  %v135_v53 = vsub.s32 4, %v466_v58  ;;  %v35_v59 = vmul.f32 0.5, %v424_v15  ;;  %vm34_vm0 = vcmp.gt.f32.partialorder %v33_v56, 0.0 }
  0xb3   :  { %v113_v1 = vsub.s32 %v109_v41, %v112_v37  ;;  %vm216_vm11 = vc.u32 %v472_v63, %v468_v60  ;;  %v215_v35 = vadd.s32 %v468_v60, %v472_v63  ;;  %vm161_vm1 = vcmp.lt.s32.totalorder %v432_v23, 0 }
  0xb4   :  { %v218_v6 = vsel %vm216_vm11, %v217_v3, %v469_v61  ;;  %v136_v60 = vsel %vm51_vm14, %v135_v53, %v466_v58  ;;  %vm160_vm2 = vcmp.le.f32.partialorder %v159_v30, 0.7853982  ;;  %v36_v0 = vsel %vm34_vm0, 1.0, %v35_v59 }
  0xb5   :  { %v115_v5 = vsub.s32 0, %v113_v1  ;;  %v219_v7 = vadd.s32 %v218_v6, %v214_v4  ;;  %v138_v62 = vsel %vm486_vm15, 0, %v136_v60  ;;  %v268_v4 = vrot.slane %v36_v0, %v419_v14 }
  0xb6   :  { %vm141_vm9 = vweird.f32 %v428_v18  ;;  %vm251_vm10 = vweird.f32 %v432_v23 }
  0xb7   :  { %v311_v8 = vmin.u32 %v115_v5, %v113_v1  ;;  %v220_v9 = vadd.s32 536870912, %v219_v7 }
  0xb9   :  { %v117_v10 = vclz %v311_v8  ;;  %v221_v11 = vshrl.u32 %v220_v9, 30 }
  0xbb   :  { %v312_v12 = vadd.s32 4294967294, %v117_v10  ;;  %v222_v13 = vshll.u32 %v221_v11, 30  ;;  %v245_v57 = vsub.s32 4, %v221_v11  ;;  %v289_v10 = vpop.permute.xlu1 %288 }
  0xbd   :  { %vm313_vm12 = vcmp.lt.s32.totalorder %v312_v12, 0  ;;  %v223_v21 = vsub.s32 %v219_v7, %v222_v13  ;;  %v246_v37 = vsel %vm161_vm1, %v245_v57, %v221_v11 }
  0xbe   :  { %v120_v20 = vsel %vm313_vm12, 0, %v312_v12  ;;  %v248_v3 = vsel %vm160_vm2, 0, %v246_v37  ;;  %vm294_vm12 = vcmask 195584  }
  0xbf   :  { %v121_v25 = vsub.s32 32, %v120_v20  ;;  %v125_v24 = vsub.s32 4294967266, %v120_v20  ;;  %v225_v26 = vsub.s32 0, %v223_v21  ;;  %v122_v27 = vshll.u32 %v113_v1, %v120_v20 }
  0xc0   :  { %v142_v1 = vadd.s32 3, %v138_v62  ;;  %v252_v6 = vadd.s32 3, %v248_v3 }
  0xc1   :  { %v123_v28 = vshrl.u32 %v105_v22, %v121_v25  ;;  %v126_v29 = vadd.s32 127, %v125_v24  ;;  %v315_v31 = vmin.u32 %v225_v26, %v223_v21  ;;  %v280_v25 = vsel %vm34_vm0, 1, %v373_v2  ;;  %v318_v2 = vld [vmem:[%s532_s3] ss:$0 sm:$0xff] }
  0xc2   :  { %v143_v7 = vand.u32 3, %v142_v1  ;;  %v253_v30 = vand.u32 3, %v252_v6 }
  0xc3   :  { %v124_v32 = vor.u32 %v123_v28, %v122_v27  ;;  %v127_v33 = vshll.u32 %v126_v29, 23  ;;  %v227_v34 = vclz %v315_v31 }
  0xc4   :  { %vm145_vm3 = vcmp.eq.s32.totalorder %v143_v7, 0  ;;  %vm148_vm4 = vcmp.eq.s32.totalorder %v143_v7, 2  ;;  %vm144_vm5 = vcmp.lt.s32.totalorder %v143_v7, 2  ;;  %vm258_vm6 = vcmp.eq.s32.totalorder %v253_v30, 2 }
  0xc5   :  { %v128_v36 = vor.u32 4788187, %v127_v33  ;;  %v316_v38 = vadd.s32 4294967294, %v227_v34  ;;  %v131_v40 = vcvt.s32.f32 %v124_v32  ;;  %vm255_vm7 = vcmp.eq.s32.totalorder %v253_v30, 0 }
  0xc6   :  { %vm254_vm8 = vcmp.lt.s32.totalorder %v253_v30, 2  ;;  %v284_v33 = vrot.slane %v280_v25, %v419_v14 }
  0xc7   :  { %v129_v39 = vand.u32 2147483647, %v128_v36  ;;  %vm317_vm13 = vcmp.lt.s32.totalorder %v316_v38, 0 }
  0xc8   :  { %v230_v44 = vsel %vm317_vm13, 0, %v316_v38  ;;  %vm285_vm11 = vcmp.eq.s32.totalorder %v284_v33, 1 }
  0xc9   :  { %v132_v42 = vmul.f32 %v131_v40, %v129_v39  ;;  %v231_v16 = vsub.s32 32, %v230_v44  ;;  %v235_v17 = vsub.s32 4294967266, %v230_v44  ;;  %v232_v41 = vshll.u32 %v223_v21, %v230_v44 }
  0xcb   :  { %v133_v46 = vxor.u32 2147483648, %v132_v42  ;;  %v233_v43 = vshrl.u32 %v215_v35, %v231_v16  ;;  %v236_v45 = vadd.s32 127, %v235_v17 }
  0xcd   :  { %v134_v48 = vsel %vm51_vm14, %v133_v46, %v132_v42  ;;  %v234_v50 = vor.u32 %v233_v43, %v232_v41  ;;  %v237_v51 = vshll.u32 %v236_v45, 23 }
  0xce   :  { %v137_v52 = vsel %vm486_vm15, %v428_v18, %v134_v48 }
  0xcf   :  { %v238_v47 = vor.u32 4788187, %v237_v51  ;;  %337 = vcosq.f32 %v137_v52  ;;  %v241_v54 = vcvt.s32.f32 %v234_v50 }
  0xd0   :  { %339 = vsinq.f32 %v137_v52 }
  0xd1   :  { %v239_v55 = vand.u32 2147483647, %v238_v47 }
  0xd3   :  { %v242_v19 = vmul.f32 %v241_v54, %v239_v55 }
  0xd5   :  { %v243_v61 = vxor.u32 2147483648, %v242_v19 }
  0xd7   :  { %v244_v63 = vsel %vm161_vm1, %v243_v61, %v242_v19 }
  0xd8   :  { %v247_v15 = vsel %vm160_vm2, %v432_v23, %v244_v63 }
  0xd9   :  { %341 = vcosq.f32 %v247_v15  ;;  %v338_v58 = vpop.eup %337 }
  0xda   :  { %343 = vsinq.f32 %v247_v15  ;;  %v340_v5 = vpop.eup %339  ;;  %v149_v9 = vxor.u32 2147483648, %v338_v58 }
  0xdb   :  { %345 = vrcp.f32 %v268_v4  ;;  %v146_v8 = vxor.u32 2147483648, %v340_v5 }
  0xdc   :  { %v150_v13 = vsel %vm148_vm4, %v149_v9, %v340_v5  ;;  %347 = vrcp.f32 %v289_v10 }
  0xdd   :  { %v147_v12 = vsel %vm145_vm3, %v338_v58, %v146_v8 }
  0xde   :  { %v151_v24 = vsel %vm144_vm5, %v147_v12, %v150_v13 }
  0xdf   :  { %v152_v31 = vsel %vm141_vm9, nan, %v151_v24 }
  0xe3   :  { %v342_v11 = vpop.eup %341 }
  0xe4   :  { %v344_v20 = vpop.eup %343  ;;  %v259_v21 = vxor.u32 2147483648, %v342_v11 }
  0xe5   :  { %v256_v22 = vxor.u32 2147483648, %v344_v20  ;;  %v346_v29 = vpop.eup %345 }
  0xe6   :  { %v260_v26 = vsel %vm258_vm6, %v259_v21, %v344_v20  ;;  %v348_v38 = vpop.eup %347 }
  0xe7   :  { %v257_v27 = vsel %vm255_vm7, %v342_v11, %v256_v22 }
  0xe8   :  { %v261_v28 = vsel %vm254_vm8, %v257_v27, %v260_v26 }
  0xe9   :  { %v262_v32 = vsel %vm251_vm10, nan, %v261_v28 }
  0xea   :  { %v263_v34 = vsub.f32 %v152_v31, %v262_v32 }
  0xec   :  { %v271_v36 = vmul.f32 %v346_v29, %v263_v34 }
  0xee   :  { %v278_v39 = vmul.f32 %v318_v2, %v271_v36 }
  0xf0   :  { %v291_v18 = vsel %vm285_vm11, %v289_v10, %v278_v39 }
  0xf1   :  { %v293_v23 = vmul.f32 %v348_v38, %v291_v18 }
  0xf3   :  { %295 = vst.msk [vmem:[#allocation2] sm:$0xff] %vm294_vm12, %v293_v23 }
  0xf4   :  { %360 = shalt.err (!%p357_p4)
}
  0xf5   :  { %s361_s28 = scalar_lea.hbm %s534_s5, 128 }
  0xf6   :  { %p362_p5 = scmp.ne.s32.totalorder %s534_s5, %s361_s28  ;;  %p365_p6 = scmp.lt.u32.totalorder %s361_s28, %s534_s5 }
  0xf8   :  { %p367_p7 = pnand %p365_p6, %p362_p5 }
  0xfa   :  { %370 = shalt.err (!%p367_p7)
}
  0xfb   :  { %305 = dma.vmem_to_hbm [thread:$0]  %s303_s25, 128, %s534_s5, [#allocation3]  }
  0xfc   :  { %371 = dma.done.wait [#allocation3], 128  }
  0xfd   :  { %372 = vsyncadd [#allocation3], 4294967168 }
  0xfe   :  { %309 = vsyncpa [#allocation3], 1 }

</bundles_post_ra>
